<compile_context>
chip_gen: v6e
topology: v6e:2x2x1
jax: 0.10.0
libtpu: 0.0.40
codegen_flags: <defaults>
</compile_context>

<pallas_src>
import functools

import jax
import jax.numpy as jnp
from jax import lax
from jax.experimental import pallas as pl
from jax.experimental.pallas import tpu as pltpu


# ----------------------------------------------------------------------------
# Tunables
# ----------------------------------------------------------------------------
_TOKEN_BLOCK = 256                 # tokens gathered per grid step (mult. of 8)
_DMA_DEPTH = 8                     # in-flight row DMAs on the HBM-gather path
# Conservative (fits v5e/v6e/v7x default scoped-VMEM budgets without raising
# vmem_limit_bytes; table is double-buffered plus the (T,V) one-hot block).
# TODO(synk): gate per-generation via pltpu.get_tpu_info() (~48 MiB on v7x vs
#             ~100 MiB on v5e/v6e) if larger resident tables are desired.
_FAST_PATH_MAX_TABLE_BYTES = 4 * 1024 * 1024
_FAST_PATH_MAX_VOCAB = 2048        # keeps the (T, V) one-hot block small


def _round_up(x, m):
    return ((x + m - 1) // m) * m


# ----------------------------------------------------------------------------
# Fast path: embedding table resident in VMEM, one-hot MXU gather.
# ----------------------------------------------------------------------------
def _vmem_table_kernel(idx_ref, tbl_ref, out_ref):
    # idx_ref: (T, 1) int32 token ids for this block (VMEM)
    # tbl_ref: (V, E) embedding table; constant block index -> loaded once
    # out_ref: (T, E) lane-dense output block
    v = tbl_ref.shape[0]
    t = out_ref.shape[0]
    ids = idx_ref[...]                                          # (T, 1) int32
    onehot = (ids == lax.broadcasted_iota(jnp.int32, (t, v), 1))
    onehot = onehot.astype(tbl_ref.dtype)                       # (T, V)
    out_ref[...] = jnp.dot(
        onehot, tbl_ref[...], preferred_element_type=jnp.float32
    ).astype(out_ref.dtype)


# ----------------------------------------------------------------------------
# Large-vocab path: table in HBM, K-deep pipelined row DMAs into the output.
# ----------------------------------------------------------------------------
def _hbm_gather_kernel(idx_ref, emb_hbm, out_ref, sem, *,
                       tokens_per_block, dma_depth):
    # idx_ref : SMEM scalar-prefetch, flat token ids (n_tok_pad,)
    # emb_hbm : (V, E) embedding table, left in HBM (memory_space=pl.ANY)
    # out_ref : (T, E) VMEM output block for this grid step
    # sem     : (K,) DMA semaphores (K row fetches in flight)
    T = tokens_per_block
    K = dma_depth
    base = pl.program_id(0) * T

    def _row_copy(src_row, dst_row, slot):
        return pltpu.make_async_copy(
            emb_hbm.at[pl.ds(src_row, 1), :],
            out_ref.at[pl.ds(dst_row, 1), :],
            sem.at[slot],
        )

    # Prime: launch the first K row fetches.
    @pl.loop(0, K)
    def _prime(t):
        _row_copy(idx_ref[base + t], t, t % K).start()

    # Steady state: retire the oldest DMA on this slot, then reuse it.
    @pl.loop(K, T)
    def _steady(t):
        slot = t % K
        _row_copy(0, t - K, slot).wait()      # same transfer size -> valid wait
        _row_copy(idx_ref[base + t], t, slot).start()

    # Drain: wait for the last K outstanding copies (one per slot).
    @pl.loop(T - K, T)
    def _drain(t):
        _row_copy(0, t, t % K).wait()


# ----------------------------------------------------------------------------
# Wrapper
# ----------------------------------------------------------------------------
def word_embedding(indices, emb_table, *, path="auto", token_block=_TOKEN_BLOCK):
    """Embedding lookup: returns emb_table[indices] with shape (N, L, E).

    path: "auto" | "vmem" (table resident in VMEM) | "dma" (HBM row gather)
    """
    N, L = indices.shape
    V, E = emb_table.shape
    out_dtype = emb_table.dtype

    # Clamp + flatten token ids (guards against out-of-range ids driving OOB DMAs).
    flat_idx = jnp.clip(indices.reshape(-1), 0, V - 1).astype(jnp.int32)
    n_tok = N * L

    # Lane-pad the embedding dim to a multiple of 128 (unmasked stores, aligned
    # row DMAs). For production-sized tables pad once at init instead.
    E_pad = _round_up(E, 128)
    if E_pad != E:
        emb_table = jnp.pad(emb_table, ((0, 0), (0, E_pad - E)))

    # Tokens per grid step: multiple of 8, at least the DMA depth.
    T = min(_round_up(max(token_block, 8), 8), _round_up(n_tok, 8))
    T = max(T, _DMA_DEPTH)
    n_tok_pad = _round_up(n_tok, T)
    n_blocks = n_tok_pad // T
    if n_tok_pad != n_tok:
        flat_idx = jnp.pad(flat_idx, (0, n_tok_pad - n_tok))

    table_bytes = V * E_pad * emb_table.dtype.itemsize
    use_vmem = (path == "vmem") or (
        path == "auto"
        and table_bytes <= _FAST_PATH_MAX_TABLE_BYTES
        and V <= _FAST_PATH_MAX_VOCAB
    )

    if use_vmem:
        idx_2d = flat_idx.reshape(n_tok_pad, 1)
        out_flat = pl.pallas_call(
            _vmem_table_kernel,
            out_shape=jax.ShapeDtypeStruct((n_tok_pad, E_pad), out_dtype),
            grid_spec=pltpu.PrefetchScalarGridSpec(
                num_scalar_prefetch=0,
                grid=(n_blocks,),
                in_specs=[
                    pl.BlockSpec((T, 1), lambda i: (i, 0)),
                    # Constant block index -> whole table resident in VMEM.
                    pl.BlockSpec((V, E_pad), lambda i: (0, 0)),
                ],
                out_specs=pl.BlockSpec((T, E_pad), lambda i: (i, 0)),
            ),
            compiler_params=pltpu.CompilerParams(
                dimension_semantics=("parallel",)),
        )(idx_2d, emb_table)
    else:
        K = min(_DMA_DEPTH, T)
        kernel = functools.partial(
            _hbm_gather_kernel, tokens_per_block=T, dma_depth=K)
        out_flat = pl.pallas_call(
            kernel,
            out_shape=jax.ShapeDtypeStruct((n_tok_pad, E_pad), out_dtype),
            grid_spec=pltpu.PrefetchScalarGridSpec(
                num_scalar_prefetch=1,              # flat token ids -> SMEM
                grid=(n_blocks,),
                in_specs=[pl.BlockSpec(memory_space=pl.ANY)],   # table in HBM
                out_specs=pl.BlockSpec((T, E_pad), lambda i, idx_ref: (i, 0)),
                scratch_shapes=[pltpu.SemaphoreType.DMA((K,))],
            ),
            compiler_params=pltpu.CompilerParams(
                dimension_semantics=("parallel",)),
        )(flat_idx, emb_table)

    return out_flat[:n_tok, :E].reshape(N, L, E)


# ----------------------------------------------------------------------------
# Self-test
# ----------------------------------------------------------------------------
if __name__ == "__main__":
    key = jax.random.PRNGKey(0)
    k_emb, k_idx, k_emb2, k_idx2 = jax.random.split(key, 4)

    # Small, deterministic synthetic "pretrained" embedding matrix + inputs.
    V, E = 64, 128        # vocab size, embedding size
    N, L = 2, 8           # batch, sentence length
    emb_table = jax.random.normal(k_emb, (V, E), dtype=jnp.float32)
    indices = jax.random.randint(k_idx, (N, L), 0, V, dtype=jnp.int32)
    ref = jnp.take(emb_table, indices, axis=0)

    # 1) Auto dispatch (small table -> VMEM-resident fast path).
    out = jax.block_until_ready(word_embedding(indices, emb_table))
    assert out.shape == (N, L, E) and out.dtype == emb_table.dtype
    assert jnp.allclose(out, ref), "fast path mismatch vs reference gather"

    # 2) Force the HBM row-DMA gather path (what a GloVe-sized vocab takes).
    out_dma = jax.block_until_ready(
        word_embedding(indices, emb_table, path="dma"))
    assert jnp.allclose(out_dma, ref), "DMA path mismatch vs reference gather"

    # 3) Non-aligned dims (GloVe-like E, odd sentence length) exercise padding.
    V2, E2, N2, L2 = 300, 100, 2, 13
    emb_table2 = jax.random.normal(k_emb2, (V2, E2), dtype=jnp.float32)
    indices2 = jax.random.randint(k_idx2, (N2, L2), 0, V2, dtype=jnp.int32)
    out2 = jax.block_until_ready(word_embedding(indices2, emb_table2))
    ref2 = jnp.take(emb_table2, indices2, axis=0)
    assert out2.shape == (N2, L2, E2)
    assert jnp.allclose(out2, ref2), "padded-dim path mismatch vs reference"

    print("KERNEL_OK")
</pallas_src>

<mosaic_0001>
module attributes {stable_mosaic.version = 11 : i64} {
  func.func @_vmem_table_kernel(%arg0: i32, %arg1: memref<16x1xi32, #tpu.memory_space<vmem>>, %arg2: memref<64x128xf32, #tpu.memory_space<vmem>>, %arg3: memref<16x128xf32, #tpu.memory_space<vmem>>) attributes {dimension_semantics = [#tpu.dimension_semantics<parallel>], iteration_bounds = array<i64: 1>, scalar_prefetch = 0 : i64, scratch_operands = 0 : i64, tpu.core_type = #tpu.core_type<tc>, window_params = [{transform_indices = @transform_0, window_bounds = array<i64: 16, 1>}, {pipeline_mode = #tpu.pipeline_mode<synchronous>, transform_indices = @transform_1, window_bounds = array<i64: 64, 128>}, {transform_indices = @transform_2, window_bounds = array<i64: 16, 128>}]} {
    %c0 = arith.constant 0 : index
    %c0_0 = arith.constant 0 : index
    %0 = vector.load %arg1[%c0, %c0_0] : memref<16x1xi32, #tpu.memory_space<vmem>>, vector<16x1xi32>
    %1 = tpu.iota {dimensions = array<i32: 1>} : vector<16x64xi32>
    %2 = vector.broadcast %0 : vector<16x1xi32> to vector<16x64xi32>
    %3 = arith.cmpi eq, %2, %1 : vector<16x64xi32>
    %4 = arith.extui %3 : vector<16x64xi1> to vector<16x64xi32>
    %5 = arith.sitofp %4 : vector<16x64xi32> to vector<16x64xf32>
    %c0_1 = arith.constant 0 : index
    %c0_2 = arith.constant 0 : index
    %6 = vector.load %arg2[%c0_1, %c0_2] : memref<64x128xf32, #tpu.memory_space<vmem>>, vector<64x128xf32>
    %cst = arith.constant dense<0.000000e+00> : vector<16x128xf32>
    %7 = tpu.matmul %5, %6, %cst {dimension_numbers = #tpu.dot_dimension_numbers<[1], [0], [0], [1], [0, 0, 1, 1], [], []>} : vector<16x64xf32>, vector<64x128xf32>, vector<16x128xf32> -> vector<16x128xf32>
    %c0_3 = arith.constant 0 : index
    %c0_4 = arith.constant 0 : index
    %8 = vector.load %arg3[%c0_3, %c0_4] : memref<16x128xf32, #tpu.memory_space<vmem>>, vector<16x128xf32>
    tpu.vector_store %arg3[%c0_3, %c0_4], %7 {strides = array<i32>} : memref<16x128xf32, #tpu.memory_space<vmem>>, vector<16x128xf32>,
    return
  }
  func.func @transform_0(%arg0: i32) -> (i32, i32) {
    %c0_i32 = arith.constant 0 : i32
    %c0_i32_0 = arith.constant 0 : i32
    return %arg0, %c0_i32 : i32, i32
  }
  func.func @transform_1(%arg0: i32) -> (i32, i32) {
    %c0_i32 = arith.constant 0 : i32
    %c0_i32_0 = arith.constant 0 : i32
    %c0_i32_1 = arith.constant 0 : i32
    return %c0_i32, %c0_i32_0 : i32, i32
  }
  func.func @transform_2(%arg0: i32) -> (i32, i32) {
    %c0_i32 = arith.constant 0 : i32
    %c0_i32_0 = arith.constant 0 : i32
    return %arg0, %c0_i32 : i32, i32
  }
}

</mosaic_0001>

<bundles_post_ra>
// kernel: tpu_custom_call.1
= control target key start
LH: loop header
LB: loop body
LE: loop exit
PB: predicated region body
PF: predicated region fallthrough
CT: control target
= control target key end

     0   :  { %7 = vsyncpa [#allocation3], 0  ;;  %s274_s0 = inlined_call_operand.vmem [shape: s32[16,1], index: 0, kind: input, shape index: {}]   ;;  %s275_s1 = inlined_call_operand.hbm [shape: f32[64,128], index: 1, kind: input, shape index: {}]   ;;  %s276_s2 = inlined_call_operand.hbm [shape: f32[16,128], index: 2, kind: output, shape index: {}]  }
   0x1   :  { %8 = vsyncpa [#allocation4], 0  ;;  %s235_s9 = smov [#allocation2]  }
   0x2   :  { %s16_s10 = sshll.u32 %s235_s9, 4  ;;  %s17_s10 = int_to_ptr.vmem [resolvable:$true] %s16_s10 }
   0x3   :  { %s199_s11 = scalar_lea.vmem %s17_s10, 1024  ;;  %p204_p1 = scmp.lt.s32.totalorder %s17_s10, %s17_s10 }
   0x4   :  { %p200_p0 = scmp.ne.s32.totalorder %s17_s10, %s199_s11  ;;  %p205_p2 = scmp.lt.s32.totalorder %s199_s11, %s199_s11 }
   0x6   :  { %p206_p3 = por %p205_p2, %p204_p1 }
   0x8   :  { %p207_p4 = pnand %p206_p3, %p200_p0 }
   0xa   :  { %210 = shalt.err (!%p207_p4)
}
   0xb   :  { %s236_s12 = smov 128   ;;  %s237_s13 = smov 8  }
   0xc   :  { %22 = dma.hbm_to_vmem [thread:$0]  %s275_s1, 1024, %s17_s10, [#allocation3], %s236_s12, %s236_s12, %s237_s13  }
   0xd   :  { %231 = dma.done.wait [#allocation3], 1024  }
   0xe   :  { %232 = vsyncadd [#allocation3], 4294966272  ;;  %v238_v0 = vmov 0   ;;  %v26_v1 = vld [vmem:[%s274_s0] sm:$0xff]  ;;  %v49_v2 = vld [vmem:[#allocation2 + $0x38] sm:$0xff]  ;;  %v28_v11 = vlaneseq  ;;  %vm50_vm0 = vcmask 523264  }
   0xf   :  { %190 = vset.pattern.permute.xlu0 %v238_v0  ;;  %165 = vmatprep.subr.mxu0 %v49_v2  ;;  %v48_v3 = vld [vmem:[#allocation2 + $0x30] sm:$0xff]  ;;  %v27_v4 = vld [vmem:[%s274_s0 + $0x8] sm:$0xff]  ;;  %v46_v6 = vld [vmem:[#allocation2 + $0x20] sm:$0xff]  ;;  %v239_v14 = vmov 0.0   ;;  %s240_s0 = smov [#allocation5]  }
  0x10   :  { %31 = vperm.xlu0 %190, %v26_v1   ;;  %166 = vmatpush3.msra.mxu0 %v49_v2  ;;  %v47_v5 = vld [vmem:[#allocation2 + $0x28] sm:$0xff]  ;;  %v45_v7 = vld [vmem:[#allocation2 + $0x18] sm:$0xff]  ;;  %v44_v8 = vld [vmem:[#allocation2 + $0x10] sm:$0xff]  ;;  %v29_v12 = vand.u32 127, %v28_v11  ;;  %s139_s1 = sshll.u32 %s240_s0, 4  ;;  %s140_s1 = int_to_ptr.vmem [resolvable:$true] %s139_s1 }
  0x11   :  { %167 = vmatprep.subr.mxu0 %v48_v3  ;;  %v43_v9 = vld [vmem:[#allocation2 + $0x8] sm:$0xff]  ;;  %v42_v10 = vld [vmem:[#allocation2] sm:$0xff]  ;;  %s211_s20 = scalar_lea.vmem %s140_s1, 256  ;;  %p216_p6 = scmp.lt.s32.totalorder %s140_s1, %s140_s1 }
  0x12   :  { %168 = vmatpush3.msra.mxu0 %v48_v3  ;;  %p212_p5 = scmp.ne.s32.totalorder %s140_s1, %s211_s20  ;;  %p217_p7 = scmp.lt.s32.totalorder %s211_s20, %s211_s20 }
  0x13   :  { %169 = vmatprep.subr.mxu0 %v47_v5 }
  0x14   :  { %34 = vperm.xlu0 %190, %v27_v4   ;;  %170 = vmatpush3.msra.mxu0 %v47_v5  ;;  %p218_p8 = por %p217_p7, %p216_p6 }
  0x15   :  { %171 = vmatprep.subr.mxu0 %v46_v6 }
  0x16   :  { %172 = vmatpush3.msra.mxu0 %v46_v6  ;;  %p219_p9 = pnand %p218_p8, %p212_p5 }
  0x17   :  { %173 = vmatprep.subr.mxu0 %v45_v7 }
  0x18   :  { %174 = vmatpush3.msra.mxu0 %v45_v7 }
  0x19   :  { %175 = vmatprep.subr.mxu0 %v44_v8 }
  0x1a   :  { %176 = vmatpush3.msra.mxu0 %v44_v8 }
  0x1b   :  { %177 = vmatprep.subr.mxu0 %v43_v9 }
  0x1c   :  { %178 = vmatpush3.msra.mxu0 %v43_v9 }
  0x1d   :  { %179 = vmatprep.subr.mxu0 %v42_v10 }
  0x1e   :  { %180 = vmatpush3.msra.mxu0 %v42_v10 }
  0x8b   :  { %v32_v13 = vpop.permute.xlu0 %31 }
  0x8c   :  { %vm36_vm1 = vcmp.eq.s32.totalorder %v32_v13, %v29_v12 }
  0x8d   :  { %v151_v15 = vsel %vm36_vm1, 1.0, %v239_v14 }
  0x8e   :  { %181 = vmatprep.mubr.msk.f32.mxu0 %vm50_vm0, %v151_v15 }
  0x8f   :  { %v35_v16 = vpop.permute.xlu0 %34 }
  0x90   :  { %vm37_vm2 = vcmp.eq.s32.totalorder %v35_v16, %v29_v12 }
  0x91   :  { %v152_v17 = vsel %vm37_vm2, 1.0, %v239_v14 }
  0x92   :  { %182 = vmatmul.mubr.msk.f32.vlgmr.msra.gmra.mxu0 %vm50_vm0, %v152_v17 }
 0x152   :  { %v183_v18 = vpop.f32.mrf.mxu0 }
 0x153   :  { %133 = vst [vmem:[#allocation5 + $0x8] sm:$0xff] %v183_v18 }
 0x154   :  { %v123_v19 = vpop.f32.mrf.mxu0 }
 0x155   :  { %132 = vst [vmem:[#allocation5] sm:$0xff] %v123_v19 }
 0x156   :  { %222 = shalt.err (!%p219_p9)
}
 0x157   :  { %145 = dma.vmem_to_hbm [thread:$0]  %s140_s1, 256, %s276_s2, [#allocation4], %s236_s12, %s236_s12, %s237_s13  }
 0x158   :  { %233 = dma.done.wait [#allocation4], 256  }
 0x159   :  { %234 = vsyncadd [#allocation4], 4294967040 }
 0x15a   :  { %149 = vsyncpa [#allocation3], 1 }
 0x15b   :  { %150 = vsyncpa [#allocation4], 1 }

</bundles_post_ra>
